<compile_context>
chip_gen: v7x
topology: tpu7x:2x2x1
jax: 0.10.0
libtpu: 0.0.40
codegen_flags: <defaults>
</compile_context>

<pallas_src>
import functools

import numpy as np
import jax
import jax.numpy as jnp
from jax.experimental import pallas as pl
from jax.experimental.pallas import tpu as pltpu


def get_means_np(C=1.0, p=784, L=10):
    """Deterministic max-Mahalanobis means, identical math to the torch version."""
    means = [np.zeros(p, dtype=np.float64) for _ in range(L)]
    means[0][0] = 1.0
    for i in range(2, L + 1):
        for j in range(1, i):
            means[i - 1][j - 1] = (
                -(1.0 + np.dot(means[i - 1], means[j - 1]) * (L - 1))
                / means[j - 1][j - 1]
                / (L - 1)
            )
        if i != L:
            means[i - 1][i - 1] = np.sqrt(1.0 - np.dot(means[i - 1], means[i - 1]))
    means = np.stack([np.sqrt(C) * m for m in means])
    return means.astype(np.float32)


def _round_up(x, m):
    return ((x + m - 1) // m) * m


def _mmlda_kernel(x_ref, mut_ref, m2_ref, o_ref, *, inv_sigma2):
    # x_ref:   (tm, p_pad)  f32   row tile of inputs
    # mut_ref: (p_pad, L_pad) f32 resident, pre-transposed means
    # m2_ref:  (1, L_pad)   f32   resident, hoisted ||mu||^2 per class
    # o_ref:   (tm, L_pad)  f32   lane-dense logits tile
    x = x_ref[...]
    x2 = jnp.sum(x * x, axis=-1, keepdims=True)                       # (tm, 1)
    xm = jnp.dot(x, mut_ref[...], preferred_element_type=jnp.float32)  # MXU (tm, L_pad)
    o_ref[...] = -(x2 - 2.0 * xm + m2_ref[...]) * inv_sigma2


def mmlda_forward(x, means, sigma=1.0, *, tm=1024):
    """x: (N, p), means: (L, p) -> logits (N, L) float32."""
    N, p = x.shape
    L, p2 = means.shape
    assert p == p2
    inv_sigma2 = float(1.0 / (sigma ** 2))

    # --- wrapper-side layout plumbing (all zero-padding is math-neutral) ---
    p_pad = _round_up(max(p, 1), 128)          # packed vregs / clean MXU K dim
    L_pad = _round_up(max(L, 1), 128)          # lane-dense output stores

    # Row tile: large to amortize grid-step overhead, multiple of 8 sublanes,
    # never larger than the (rounded-up) batch.
    tm = max(8, min(tm, _round_up(N, 8)))
    N_pad = _round_up(N, tm)

    x_p = jnp.zeros((N_pad, p_pad), jnp.float32).at[:N, :p].set(
        x.astype(jnp.float32)
    )
    # Pre-transposed means, shape (p_pad, L_pad); padded rows/cols are zero so
    # padded classes just produce -||x||^2/sigma^2 (sliced away below).
    mu_t = jnp.zeros((p_pad, L_pad), jnp.float32).at[:p, :L].set(
        means.astype(jnp.float32).T
    )
    # Hoisted per-class squared norm.
    m2 = jnp.sum(mu_t * mu_t, axis=0, keepdims=True)  # (1, L_pad)

    grid = (N_pad // tm,)

    # Scoped-VMEM budget: double-buffered x and out tiles + resident means/m2,
    # with headroom; capped below v7x's 64 MiB physical VMEM.
    vmem_bytes = (
        2 * tm * p_pad * 4        # x tile, double-buffered
        + 2 * tm * L_pad * 4      # out tile, double-buffered
        + p_pad * L_pad * 4       # resident means^T
        + 8 * L_pad * 4           # m2 (sublane-padded)
    )
    vmem_bytes = min(max(int(vmem_bytes * 1.5) + (1 << 20), 4 << 20), 56 << 20)

    kernel = functools.partial(_mmlda_kernel, inv_sigma2=inv_sigma2)

    logits_padded = pl.pallas_call(
        kernel,
        out_shape=jax.ShapeDtypeStruct((N_pad, L_pad), jnp.float32),
        grid_spec=pltpu.PrefetchScalarGridSpec(
            num_scalar_prefetch=0,
            grid=grid,
            in_specs=[
                pl.BlockSpec((tm, p_pad), lambda i: (i, 0)),      # x row tile
                pl.BlockSpec((p_pad, L_pad), lambda i: (0, 0)),   # means^T, resident
                pl.BlockSpec((1, L_pad), lambda i: (0, 0)),       # ||mu||^2, resident
            ],
            out_specs=pl.BlockSpec((tm, L_pad), lambda i: (i, 0)),
        ),
        compiler_params=pltpu.CompilerParams(
            dimension_semantics=("parallel",),
            vmem_limit_bytes=vmem_bytes,
        ),
    )(x_p, mu_t, m2)

    return logits_padded[:N, :L]


def _reference(x, means, sigma):
    x = x.astype(jnp.float32)
    means = means.astype(jnp.float32)
    return -jnp.sum((x[:, None, :] - means[None, :, :]) ** 2, axis=2) / (sigma ** 2)


if __name__ == "__main__":
    key = jax.random.PRNGKey(0)

    # Case 1: small MMLDA config matching the module example scale.
    C, sigma, p, L, N = 1.0, 1.0, 32, 10, 8
    means = jnp.asarray(get_means_np(C=C, p=p, L=L))            # (L, p)
    k1, k2 = jax.random.split(key)
    x = jax.random.normal(k1, (N, p), dtype=jnp.float32)

    logits = mmlda_forward(x, means, sigma=sigma)
    jax.block_until_ready(logits)
    assert logits.shape == (N, L)
    np.testing.assert_allclose(
        np.asarray(logits), np.asarray(_reference(x, means, sigma)),
        rtol=1e-5, atol=1e-5,
    )

    # Case 2: exercise padding / tail handling (N not multiple of 8,
    # p and L not multiples of 128), still tiny.
    C2, sigma2, p2, L2, N2 = 2.0, 0.5, 50, 7, 20
    means2 = jnp.asarray(get_means_np(C=C2, p=p2, L=L2))
    x2 = jax.random.normal(k2, (N2, p2), dtype=jnp.float32)

    logits2 = mmlda_forward(x2, means2, sigma=sigma2)
    jax.block_until_ready(logits2)
    assert logits2.shape == (N2, L2)
    np.testing.assert_allclose(
        np.asarray(logits2), np.asarray(_reference(x2, means2, sigma2)),
        rtol=1e-5, atol=1e-5,
    )

    print("KERNEL_OK")
</pallas_src>

<mosaic_0001>
module attributes {stable_mosaic.version = 11 : i64} {
  func.func @_mmlda_kernel(%arg0: i32, %arg1: memref<8x128xf32, #tpu.memory_space<vmem>>, %arg2: memref<128x128xf32, #tpu.memory_space<vmem>>, %arg3: memref<1x128xf32, #tpu.memory_space<vmem>>, %arg4: memref<8x128xf32, #tpu.memory_space<vmem>>) attributes {dimension_semantics = [#tpu.dimension_semantics<parallel>], iteration_bounds = array<i64: 1>, scalar_prefetch = 0 : i64, scratch_operands = 0 : i64, tpu.core_type = #tpu.core_type<tc>, window_params = [{transform_indices = @transform_0, window_bounds = array<i64: 8, 128>}, {pipeline_mode = #tpu.pipeline_mode<synchronous>, transform_indices = @transform_1, window_bounds = array<i64: 128, 128>}, {pipeline_mode = #tpu.pipeline_mode<synchronous>, transform_indices = @transform_2, window_bounds = array<i64: 1, 128>}, {transform_indices = @transform_3, window_bounds = array<i64: 8, 128>}]} {
    %c0 = arith.constant 0 : index
    %c0_0 = arith.constant 0 : index
    %0 = vector.load %arg1[%c0, %c0_0] : memref<8x128xf32, #tpu.memory_space<vmem>>, vector<8x128xf32>
    %1 = arith.mulf %0, %0 : vector<8x128xf32>
    %cst = arith.constant dense<0.000000e+00> : vector<8xf32>
    %2 = vector.multi_reduction <add>, %1, %cst [1] : vector<8x128xf32> to vector<8xf32>
    %3 = vector.shape_cast %2 : vector<8xf32> to vector<8x1xf32>
    %c0_1 = arith.constant 0 : index
    %c0_2 = arith.constant 0 : index
    %4 = vector.load %arg2[%c0_1, %c0_2] : memref<128x128xf32, #tpu.memory_space<vmem>>, vector<128x128xf32>
    %cst_3 = arith.constant dense<0.000000e+00> : vector<8x128xf32>
    %5 = tpu.matmul %0, %4, %cst_3 {dimension_numbers = #tpu.dot_dimension_numbers<[1], [0], [0], [1], [0, 0, 1, 1], [], []>} : vector<8x128xf32>, vector<128x128xf32>, vector<8x128xf32> -> vector<8x128xf32>
    %cst_4 = arith.constant 2.000000e+00 : f32
    %6 = vector.broadcast %cst_4 : f32 to vector<8x128xf32>
    %7 = arith.mulf %6, %5 : vector<8x128xf32>
    %8 = vector.broadcast %3 : vector<8x1xf32> to vector<8x128xf32>
    %9 = arith.subf %8, %7 : vector<8x128xf32>
    %c0_5 = arith.constant 0 : index
    %c0_6 = arith.constant 0 : index
    %10 = vector.load %arg3[%c0_5, %c0_6] : memref<1x128xf32, #tpu.memory_space<vmem>>, vector<1x128xf32>
    %11 = vector.broadcast %10 : vector<1x128xf32> to vector<8x128xf32>
    %12 = arith.addf %9, %11 : vector<8x128xf32>
    %cst_7 = arith.constant 0.000000e+00 : f32
    %13 = vector.broadcast %cst_7 : f32 to vector<8x128xf32>
    %14 = arith.subf %13, %12 : vector<8x128xf32>
    %cst_8 = arith.constant 1.000000e+00 : f32
    %15 = vector.broadcast %cst_8 : f32 to vector<8x128xf32>
    %16 = arith.mulf %14, %15 : vector<8x128xf32>
    %c0_9 = arith.constant 0 : index
    %c0_10 = arith.constant 0 : index
    %17 = vector.load %arg4[%c0_9, %c0_10] : memref<8x128xf32, #tpu.memory_space<vmem>>, vector<8x128xf32>
    tpu.vector_store %arg4[%c0_9, %c0_10], %16 {strides = array<i32>} : memref<8x128xf32, #tpu.memory_space<vmem>>, vector<8x128xf32>,
    return
  }
  func.func @transform_0(%arg0: i32) -> (i32, i32) {
    %c0_i32 = arith.constant 0 : i32
    %c0_i32_0 = arith.constant 0 : i32
    return %arg0, %c0_i32 : i32, i32
  }
  func.func @transform_1(%arg0: i32) -> (i32, i32) {
    %c0_i32 = arith.constant 0 : i32
    %c0_i32_0 = arith.constant 0 : i32
    %c0_i32_1 = arith.constant 0 : i32
    return %c0_i32, %c0_i32_0 : i32, i32
  }
  func.func @transform_2(%arg0: i32) -> (i32, i32) {
    %c0_i32 = arith.constant 0 : i32
    %c0_i32_0 = arith.constant 0 : i32
    %c0_i32_1 = arith.constant 0 : i32
    return %c0_i32, %c0_i32_0 : i32, i32
  }
  func.func @transform_3(%arg0: i32) -> (i32, i32) {
    %c0_i32 = arith.constant 0 : i32
    %c0_i32_0 = arith.constant 0 : i32
    return %arg0, %c0_i32 : i32, i32
  }
}

</mosaic_0001>

<bundles_post_ra>
// kernel: tpu_custom_call.1
= control target key start
LH: loop header
LB: loop body
LE: loop exit
PB: predicated region body
PF: predicated region fallthrough
CT: control target
= control target key end

     0   :  { %8 = vsyncpa [#allocation3], 0  ;;  %s390_s0 = inlined_call_operand.hbm [shape: f32[8,128], index: 0, kind: input, shape index: {}]   ;;  %s391_s1 = inlined_call_operand.hbm [shape: f32[128,128], index: 1, kind: input, shape index: {}]   ;;  %s392_s2 = inlined_call_operand.vmem [shape: f32[1,128], index: 2, kind: input, shape index: {}]   ;;  %s393_s3 = inlined_call_operand.hbm [shape: f32[8,128], index: 3, kind: output, shape index: {}]  }
   0x1   :  { %9 = vsyncpa [#allocation6], 0 }
   0x2   :  { %10 = vsyncpa [#allocation4], 0  ;;  %s316_s12 = smov [#allocation2]   ;;  %s317_s14 = smov [#allocation5]  }
   0x3   :  { %s17_s13 = sshll.u32 %s316_s12, 4  ;;  %s26_s15 = sshll.u32 %s317_s14, 4  ;;  %s18_s13 = int_to_ptr.vmem [resolvable:$true] %s17_s13  ;;  %s344_s15 = int_to_ptr.vmem [resolvable:$true] %s26_s15 }
   0x4   :  { %s244_s18 = scalar_lea.hbm %s390_s0, 128 }
   0x5   :  { %p245_p0 = scmp.ne.s32.totalorder %s390_s0, %s244_s18  ;;  %p248_p1 = scmp.lt.u32.totalorder %s244_s18, %s390_s0 }
   0x7   :  { %p250_p2 = pnand %p248_p1, %p245_p0 }
   0x9   :  { %253 = shalt.err (!%p250_p2)
}
   0xa   :  { %s254_s23 = scalar_lea.vmem %s18_s13, 128  ;;  %p259_p4 = scmp.lt.s32.totalorder %s18_s13, %s18_s13 }
   0xb   :  { %p255_p3 = scmp.ne.s32.totalorder %s18_s13, %s254_s23  ;;  %p260_p5 = scmp.lt.s32.totalorder %s254_s23, %s254_s23 }
   0xd   :  { %p261_p6 = por %p260_p5, %p259_p4 }
   0xf   :  { %p262_p7 = pnand %p261_p6, %p255_p3 }
  0x11   :  { %265 = shalt.err (!%p262_p7)
}
  0x12   :  { %20 = dma.hbm_to_vmem [thread:$0]  %s390_s0, 128, %s18_s13, [#allocation3]  }
  0x13   :  { %s266_s28 = scalar_lea.hbm %s391_s1, 2048 }
  0x14   :  { %p267_p8 = scmp.ne.s32.totalorder %s391_s1, %s266_s28  ;;  %p270_p9 = scmp.lt.u32.totalorder %s266_s28, %s391_s1 }
  0x16   :  { %p272_p10 = pnand %p270_p9, %p267_p8 }
  0x18   :  { %275 = shalt.err (!%p272_p10)
}
  0x19   :  { %s276_s6 = scalar_lea.vmem %s344_s15, 2048  ;;  %p281_p12 = scmp.lt.s32.totalorder %s344_s15, %s344_s15 }
  0x1a   :  { %p277_p11 = scmp.ne.s32.totalorder %s344_s15, %s276_s6  ;;  %p282_p13 = scmp.lt.s32.totalorder %s276_s6, %s276_s6 }
  0x1c   :  { %p283_p0 = por %p282_p13, %p281_p12 }
  0x1e   :  { %p284_p1 = pnand %p283_p0, %p277_p11 }
  0x20   :  { %287 = shalt.err (!%p284_p1)
}
  0x21   :  { %s318_s0 = smov 128   ;;  %s319_s7 = smov 8  }
  0x22   :  { %32 = dma.hbm_to_vmem [thread:$0]  %s391_s1, 2048, %s344_s15, [#allocation6], %s318_s0, %s318_s0, %s319_s7  }
  0x23   :  { %310 = dma.done.wait [#allocation3], 128  }
  0x24   :  { %311 = vsyncadd [#allocation3], 4294967168 }
  0x25   :  { %312 = dma.done.wait [#allocation6], 2048  }
  0x26   :  { %313 = vsyncadd [#allocation6], 4294965248  ;;  %v320_v0 = vmov 0.0|0.0   ;;  %vm321_vm0 = vmmov 0   ;;  %v322_v1 = vmov 0.0   ;;  %v45_v2 = vld [vmem:[#allocation5] sm:$0xff] }
  0x27   :  { %212 = vmatprep.subr.bf16.mxu0 %v320_v0  ;;  %209 = vmatprep.mubr.msk.f32.mxu0 %vm321_vm0, %v322_v1  ;;  %v46_v3 = vld [vmem:[#allocation5 + $0x8] sm:$0xff]  ;;  %v47_v4 = vld [vmem:[#allocation5 + $0x10] sm:$0xff]  ;;  %v48_v6 = vld [vmem:[#allocation5 + $0x18] sm:$0xff]  ;;  %s323_s11 = smov [#allocation7]  }
  0x28   :  { %v213_v5 = vpack.c.bf16 %v46_v3, %v45_v2  ;;  %v216_v7 = vpack.c.bf16 %v48_v6, %v47_v4  ;;  %v49_v8 = vld [vmem:[#allocation5 + $0x20] sm:$0xff]  ;;  %v50_v9 = vld [vmem:[#allocation5 + $0x28] sm:$0xff]  ;;  %v41_v10 = vld [vmem:[#allocation2] sm:$0xff]  ;;  %s149_s12 = sshll.u32 %s323_s11, 4  ;;  %s150_s12 = int_to_ptr.vmem [resolvable:$true] %s149_s12 }
  0x29   :  { %v42_v11 = vmul.f32 %v41_v10, %v41_v10  ;;  %v219_v12 = vpack.c.bf16 %v50_v9, %v49_v8  ;;  %v51_v13 = vld [vmem:[#allocation5 + $0x30] sm:$0xff]  ;;  %v52_v14 = vld [vmem:[#allocation5 + $0x38] sm:$0xff]  ;;  %v53_v16 = vld [vmem:[#allocation5 + $0x40] sm:$0xff]  ;;  %s288_s13 = scalar_lea.vmem %s150_s12, 128  ;;  %p293_p3 = scmp.lt.s32.totalorder %s150_s12, %s150_s12 }
  0x2a   :  { %214 = vmatpush3.bf16.msra.mxu0 %v213_v5  ;;  %v222_v15 = vpack.c.bf16 %v52_v14, %v51_v13  ;;  %v54_v17 = vld [vmem:[#allocation5 + $0x48] sm:$0xff]  ;;  %v55_v19 = vld [vmem:[#allocation5 + $0x50] sm:$0xff]  ;;  %v56_v20 = vld [vmem:[#allocation5 + $0x58] sm:$0xff]  ;;  %p289_p2 = scmp.ne.s32.totalorder %s150_s12, %s288_s13  ;;  %p294_p4 = scmp.lt.s32.totalorder %s288_s13, %s288_s13 }
  0x2b   :  { %215 = vmatprep.subr.bf16.mxu0 %v320_v0  ;;  %43 = vadd.xlane.f32.xlu0 %v42_v11  ;;  %v225_v18 = vpack.c.bf16 %v54_v17, %v53_v16  ;;  %v228_v21 = vpack.c.bf16 %v56_v20, %v55_v19  ;;  %v57_v22 = vld [vmem:[#allocation5 + $0x60] sm:$0xff]  ;;  %v58_v23 = vld [vmem:[#allocation5 + $0x68] sm:$0xff]  ;;  %v59_v25 = vld [vmem:[#allocation5 + $0x70] sm:$0xff] }
  0x2c   :  { %v231_v24 = vpack.c.bf16 %v58_v23, %v57_v22  ;;  %v60_v26 = vld [vmem:[#allocation5 + $0x78] sm:$0xff]  ;;  %p295_p5 = por %p294_p4, %p293_p3 }
  0x2d   :  { %v234_v27 = vpack.c.bf16 %v60_v26, %v59_v25  ;;  %v159_v32 = vld [vmem:[%s392_s2] ss:$0 sm:$0xff] }
  0x2e   :  { %217 = vmatpush3.bf16.msra.mxu0 %v216_v7  ;;  %p296_p6 = pnand %p295_p5, %p289_p2 }
  0x2f   :  { %218 = vmatprep.subr.bf16.mxu0 %v320_v0 }
  0x32   :  { %220 = vmatpush3.bf16.msra.mxu0 %v219_v12 }
  0x33   :  { %221 = vmatprep.subr.bf16.mxu0 %v320_v0 }
  0x36   :  { %223 = vmatpush3.bf16.msra.mxu0 %v222_v15 }
  0x37   :  { %224 = vmatprep.subr.bf16.mxu0 %v320_v0 }
  0x3a   :  { %226 = vmatpush3.bf16.msra.mxu0 %v225_v18 }
  0x3b   :  { %227 = vmatprep.subr.bf16.mxu0 %v320_v0 }
  0x3e   :  { %229 = vmatpush3.bf16.msra.mxu0 %v228_v21 }
  0x3f   :  { %230 = vmatprep.subr.bf16.mxu0 %v320_v0 }
  0x42   :  { %232 = vmatpush3.bf16.msra.mxu0 %v231_v24 }
  0x43   :  { %233 = vmatprep.subr.bf16.mxu0 %v320_v0 }
  0x46   :  { %235 = vmatpush3.bf16.msra.mxu0 %v234_v27 }
  0x49   :  { %210 = vmatmul.mubr.f32.vlgmr.msra.gmra.mrb[0].mxu0 %v41_v10 }
  0xb8   :  { %v44_v29 = vpop.xlane.xlu0 %43 }
 0x11c   :  { %v127_v28 = vpop.f32.mrb[0].mxu0 }
 0x11d   :  { %v131_v30 = vmul.f32 2.0, %v127_v28  ;;  %v211_v31 = vpop.f32.mrb[1].mxu0 }
 0x11f   :  { %v132_v33 = vsub.f32 %v44_v29, %v131_v30 }
 0x121   :  { %v140_v34 = vadd.f32 %v159_v32, %v132_v33 }
 0x123   :  { %v141_v35 = vsub.f32 0.0, %v140_v34 }
 0x125   :  { %142 = vst [vmem:[#allocation7] sm:$0xff] %v141_v35 }
 0x126   :  { %299 = shalt.err (!%p296_p6)
}
 0x127   :  { %s300_s16 = scalar_lea.hbm %s393_s3, 128 }
 0x128   :  { %p301_p7 = scmp.ne.s32.totalorder %s393_s3, %s300_s16  ;;  %p304_p8 = scmp.lt.u32.totalorder %s300_s16, %s393_s3 }
 0x12a   :  { %p306_p9 = pnand %p304_p8, %p301_p7 }
 0x12c   :  { %309 = shalt.err (!%p306_p9)
}
 0x12d   :  { %152 = dma.vmem_to_hbm [thread:$0]  %s150_s12, 128, %s393_s3, [#allocation4]  }
 0x12e   :  { %314 = dma.done.wait [#allocation4], 128  }
 0x12f   :  { %315 = vsyncadd [#allocation4], 4294967168 }
 0x130   :  { %156 = vsyncpa [#allocation3], 1 }
 0x131   :  { %157 = vsyncpa [#allocation6], 1 }
 0x132   :  { %158 = vsyncpa [#allocation4], 1 }

</bundles_post_ra>
